<compile_context>
chip_gen: v5e
topology: v5e:2x2
jax: 0.10.0
libtpu: 0.0.40
codegen_flags: <defaults>
</compile_context>

<pallas_src>
import jax
import jax.numpy as jnp
from jax.experimental import pallas as pl
from jax.experimental.pallas import tpu as pltpu


def _round_up(x, m):
    return ((x + m - 1) // m) * m


def _make_mlp_kernel(n_layers):
    """Fused MLP body: chained bf16 MXU matmuls with f32 accumulation, all resident in VMEM."""

    def kernel(*refs):
        x_ref = refs[0]
        o_ref = refs[-1]
        p_refs = refs[1:-1]              # [w0, b0, w1, b1, ...] (whole-array VMEM blocks)
        h = x_ref[...]                   # bf16 activations (cast once in the wrapper)
        for i in range(n_layers):
            w = p_refs[2 * i][...]       # bf16 [In_pad, Out_pad]
            b = p_refs[2 * i + 1][...]   # f32  [1, Out_pad] broadcast row
            acc = jnp.dot(h, w, preferred_element_type=jnp.float32) + b
            if i != n_layers - 1:
                # ReLU in f32 (v5e has no bf16 VPU), then bf16 for the next MXU pass.
                h = jnp.maximum(acc, 0.0).astype(jnp.bfloat16)
            else:
                h = acc
            # Dropout(p=0.2) between hidden layers: identity in eval mode -> no-op.
        o_ref[...] = h.astype(o_ref.dtype)

    return kernel


def init_fc_params(key, layer_units, w_dtype=jnp.bfloat16):
    """PyTorch-style Linear init: U(-1/sqrt(fan_in), 1/sqrt(fan_in)).

    Weights are pre-transposed to [in, out], cast to bf16, and zero-padded to
    128-aligned feature dims; biases kept in f32 as [1, out_pad] broadcast rows.
    Returns a list of (w_pad, b_pad, out_features) per Linear layer.
    """
    params = []
    sizes = list(zip(layer_units[:-1], layer_units[1:]))
    keys = jax.random.split(key, 2 * len(sizes))
    for i, (fan_in, fan_out) in enumerate(sizes):
        bound = float(fan_in) ** -0.5
        w = jax.random.uniform(keys[2 * i], (fan_in, fan_out),
                               minval=-bound, maxval=bound, dtype=jnp.float32)
        b = jax.random.uniform(keys[2 * i + 1], (fan_out,),
                               minval=-bound, maxval=bound, dtype=jnp.float32)
        in_pad = _round_up(fan_in, 128)
        out_pad = _round_up(fan_out, 128)
        w_pad = jnp.zeros((in_pad, out_pad), w_dtype).at[:fan_in, :fan_out].set(
            w.astype(w_dtype))
        b_pad = jnp.zeros((1, out_pad), jnp.float32).at[0, :fan_out].set(b)
        params.append((w_pad, b_pad, fan_out))
    return params


def fc_network_forward(x, params, *, tile_b=512):
    """Forward pass: flatten NCHW, run every Linear(+ReLU) in one fused Pallas kernel."""
    B = x.shape[0]
    h = x.reshape(B, -1).astype(jnp.bfloat16)     # x.view(B, -1), bf16 halves input DMA
    in_features = h.shape[1]

    n_layers = len(params)
    in_pad = params[0][0].shape[0]                # padded fan-in of first layer
    out_pad = params[-1][0].shape[1]              # padded fan-out of last layer (>=128)
    out_true = params[-1][2]

    if in_features != in_pad:                     # only if fan-in isn't already 128-aligned
        h = jnp.pad(h, ((0, 0), (0, in_pad - in_features)))

    # Batch grid: weights stay VMEM-resident (constant index_map), input/output tiles
    # pipeline across batch tiles. A single full-array block when B is tiny (exempt
    # from the (8,128) divisibility rule).
    n_tiles = pl.cdiv(B, tile_b)
    block_b = B if n_tiles == 1 else tile_b       # tile_b is a multiple of 8

    flat_inputs = [h]
    in_specs = [pl.BlockSpec((block_b, in_pad), lambda i: (i, 0))]
    for (w_p, b_p, _) in params:
        flat_inputs.extend([w_p, b_p])
        in_specs.append(pl.BlockSpec(w_p.shape, lambda i: (0, 0)))   # resident weights
        in_specs.append(pl.BlockSpec(b_p.shape, lambda i: (0, 0)))   # resident biases

    # Right-size the VMEM budget: resident params + double-buffered act tiles (+ margin).
    w_bytes = sum(int(w.size) * w.dtype.itemsize + int(b.size) * b.dtype.itemsize
                  for w, b, _ in params)
    max_feat = max(int(w.shape[1]) for w, _, _ in params)
    act_bytes = 2 * block_b * in_pad * 2          # bf16 input tile, double-buffered
    out_bytes = 2 * block_b * out_pad * 4         # f32 output tile, double-buffered
    inter_bytes = 2 * block_b * max_feat * 4      # transient f32 intermediates
    vmem_limit = min(64 * 1024 * 1024,
                     max(4 * 1024 * 1024,
                         _round_up(int(1.5 * (w_bytes + act_bytes + out_bytes
                                              + inter_bytes)), 1 << 20)))

    out_padded = pl.pallas_call(
        _make_mlp_kernel(n_layers),
        out_shape=jax.ShapeDtypeStruct((B, out_pad), jnp.float32),
        grid=(n_tiles,),
        in_specs=in_specs,
        out_specs=pl.BlockSpec((block_b, out_pad), lambda i: (i, 0)),
        compiler_params=pltpu.CompilerParams(
            dimension_semantics=("parallel",),    # shards batch tiles across v7x's 2 TCs
            vmem_limit_bytes=vmem_limit),
    )(*flat_inputs)

    return out_padded[:, :out_true]               # strip lane padding -> [B, num_classes]


if __name__ == "__main__":
    # Small shapes consistent with the module: NCHW image flattened into the MLP.
    B, C, H, W = 2, 4, 16, 16
    input_size = C * H * W                        # 1024
    layer_units = [input_size, 256, 128, 10]

    key = jax.random.PRNGKey(0)
    kx, kp = jax.random.split(key)
    x = jax.random.normal(kx, (B, C, H, W), dtype=jnp.float32)
    params = init_fc_params(kp, layer_units)

    logits = jax.block_until_ready(fc_network_forward(x, params))

    # Reference in plain JAX with identical bf16 activations / f32 accumulation.
    ref = x.reshape(B, -1).astype(jnp.bfloat16)
    for i, (w_pad, b_pad, _) in enumerate(params):
        fi, fo = layer_units[i], layer_units[i + 1]
        w = w_pad[:fi, :fo]
        b = b_pad[0, :fo]
        acc = jnp.dot(ref, w, preferred_element_type=jnp.float32) + b
        if i != len(params) - 1:
            ref = jnp.maximum(acc, 0.0).astype(jnp.bfloat16)
        else:
            ref = acc

    assert logits.shape == (B, layer_units[-1])
    assert jnp.allclose(logits, ref, atol=1e-2, rtol=1e-2), \
        f"max abs diff = {jnp.max(jnp.abs(logits - ref))}"

    print("KERNEL_OK")
</pallas_src>

<mosaic_0001>
module attributes {stable_mosaic.version = 11 : i64} {
  func.func @kernel(%arg0: i32, %arg1: memref<2x1024xbf16, #tpu.memory_space<vmem>>, %arg2: memref<1024x256xbf16, #tpu.memory_space<vmem>>, %arg3: memref<1x256xf32, #tpu.memory_space<vmem>>, %arg4: memref<256x128xbf16, #tpu.memory_space<vmem>>, %arg5: memref<1x128xf32, #tpu.memory_space<vmem>>, %arg6: memref<128x128xbf16, #tpu.memory_space<vmem>>, %arg7: memref<1x128xf32, #tpu.memory_space<vmem>>, %arg8: memref<2x128xf32, #tpu.memory_space<vmem>>) attributes {dimension_semantics = [#tpu.dimension_semantics<parallel>], iteration_bounds = array<i64: 1>, scalar_prefetch = 0 : i64, scratch_operands = 0 : i64, tpu.core_type = #tpu.core_type<tc>, window_params = [{transform_indices = @transform_0, window_bounds = array<i64: 2, 1024>}, {pipeline_mode = #tpu.pipeline_mode<synchronous>, transform_indices = @transform_1, window_bounds = array<i64: 1024, 256>}, {pipeline_mode = #tpu.pipeline_mode<synchronous>, transform_indices = @transform_2, window_bounds = array<i64: 1, 256>}, {pipeline_mode = #tpu.pipeline_mode<synchronous>, transform_indices = @transform_3, window_bounds = array<i64: 256, 128>}, {pipeline_mode = #tpu.pipeline_mode<synchronous>, transform_indices = @transform_4, window_bounds = array<i64: 1, 128>}, {pipeline_mode = #tpu.pipeline_mode<synchronous>, transform_indices = @transform_5, window_bounds = array<i64: 128, 128>}, {pipeline_mode = #tpu.pipeline_mode<synchronous>, transform_indices = @transform_6, window_bounds = array<i64: 1, 128>}, {transform_indices = @transform_7, window_bounds = array<i64: 2, 128>}]} {
    %c0 = arith.constant 0 : index
    %c0_0 = arith.constant 0 : index
    %0 = vector.load %arg1[%c0, %c0_0] : memref<2x1024xbf16, #tpu.memory_space<vmem>>, vector<2x1024xbf16>
    %c0_1 = arith.constant 0 : index
    %c0_2 = arith.constant 0 : index
    %1 = vector.load %arg2[%c0_1, %c0_2] : memref<1024x256xbf16, #tpu.memory_space<vmem>>, vector<1024x256xbf16>
    %c0_3 = arith.constant 0 : index
    %c0_4 = arith.constant 0 : index
    %2 = vector.load %arg3[%c0_3, %c0_4] : memref<1x256xf32, #tpu.memory_space<vmem>>, vector<1x256xf32>
    %cst = arith.constant dense<0.000000e+00> : vector<2x256xf32>
    %3 = tpu.matmul %0, %1, %cst {dimension_numbers = #tpu.dot_dimension_numbers<[1], [0], [0], [1], [0, 0, 1, 1], [], []>} : vector<2x1024xbf16>, vector<1024x256xbf16>, vector<2x256xf32> -> vector<2x256xf32>
    %4 = vector.broadcast %2 : vector<1x256xf32> to vector<2x256xf32>
    %5 = arith.addf %3, %4 : vector<2x256xf32>
    %cst_5 = arith.constant 0.000000e+00 : f32
    %6 = vector.broadcast %cst_5 : f32 to vector<2x256xf32>
    %7 = arith.maximumf %5, %6 : vector<2x256xf32>
    %8 = arith.truncf %7 : vector<2x256xf32> to vector<2x256xbf16>
    %c0_6 = arith.constant 0 : index
    %c0_7 = arith.constant 0 : index
    %9 = vector.load %arg4[%c0_6, %c0_7] : memref<256x128xbf16, #tpu.memory_space<vmem>>, vector<256x128xbf16>
    %c0_8 = arith.constant 0 : index
    %c0_9 = arith.constant 0 : index
    %10 = vector.load %arg5[%c0_8, %c0_9] : memref<1x128xf32, #tpu.memory_space<vmem>>, vector<1x128xf32>
    %cst_10 = arith.constant dense<0.000000e+00> : vector<2x128xf32>
    %11 = tpu.matmul %8, %9, %cst_10 {dimension_numbers = #tpu.dot_dimension_numbers<[1], [0], [0], [1], [0, 0, 1, 1], [], []>} : vector<2x256xbf16>, vector<256x128xbf16>, vector<2x128xf32> -> vector<2x128xf32>
    %12 = vector.broadcast %10 : vector<1x128xf32> to vector<2x128xf32>
    %13 = arith.addf %11, %12 : vector<2x128xf32>
    %cst_11 = arith.constant 0.000000e+00 : f32
    %14 = vector.broadcast %cst_11 : f32 to vector<2x128xf32>
    %15 = arith.maximumf %13, %14 : vector<2x128xf32>
    %16 = arith.truncf %15 : vector<2x128xf32> to vector<2x128xbf16>
    %c0_12 = arith.constant 0 : index
    %c0_13 = arith.constant 0 : index
    %17 = vector.load %arg6[%c0_12, %c0_13] : memref<128x128xbf16, #tpu.memory_space<vmem>>, vector<128x128xbf16>
    %c0_14 = arith.constant 0 : index
    %c0_15 = arith.constant 0 : index
    %18 = vector.load %arg7[%c0_14, %c0_15] : memref<1x128xf32, #tpu.memory_space<vmem>>, vector<1x128xf32>
    %cst_16 = arith.constant dense<0.000000e+00> : vector<2x128xf32>
    %19 = tpu.matmul %16, %17, %cst_16 {dimension_numbers = #tpu.dot_dimension_numbers<[1], [0], [0], [1], [0, 0, 1, 1], [], []>} : vector<2x128xbf16>, vector<128x128xbf16>, vector<2x128xf32> -> vector<2x128xf32>
    %20 = vector.broadcast %18 : vector<1x128xf32> to vector<2x128xf32>
    %21 = arith.addf %19, %20 : vector<2x128xf32>
    %c0_17 = arith.constant 0 : index
    %c0_18 = arith.constant 0 : index
    %22 = vector.load %arg8[%c0_17, %c0_18] : memref<2x128xf32, #tpu.memory_space<vmem>>, vector<2x128xf32>
    tpu.vector_store %arg8[%c0_17, %c0_18], %21 {strides = array<i32>} : memref<2x128xf32, #tpu.memory_space<vmem>>, vector<2x128xf32>,
    return
  }
  func.func @transform_0(%arg0: i32) -> (i32, i32) {
    %c0_i32 = arith.constant 0 : i32
    %c0_i32_0 = arith.constant 0 : i32
    return %arg0, %c0_i32 : i32, i32
  }
  func.func @transform_1(%arg0: i32) -> (i32, i32) {
    %c0_i32 = arith.constant 0 : i32
    %c0_i32_0 = arith.constant 0 : i32
    %c0_i32_1 = arith.constant 0 : i32
    return %c0_i32, %c0_i32_0 : i32, i32
  }
  func.func @transform_2(%arg0: i32) -> (i32, i32) {
    %c0_i32 = arith.constant 0 : i32
    %c0_i32_0 = arith.constant 0 : i32
    %c0_i32_1 = arith.constant 0 : i32
    return %c0_i32, %c0_i32_0 : i32, i32
  }
  func.func @transform_3(%arg0: i32) -> (i32, i32) {
    %c0_i32 = arith.constant 0 : i32
    %c0_i32_0 = arith.constant 0 : i32
    %c0_i32_1 = arith.constant 0 : i32
    return %c0_i32, %c0_i32_0 : i32, i32
  }
  func.func @transform_4(%arg0: i32) -> (i32, i32) {
    %c0_i32 = arith.constant 0 : i32
    %c0_i32_0 = arith.constant 0 : i32
    %c0_i32_1 = arith.constant 0 : i32
    return %c0_i32, %c0_i32_0 : i32, i32
  }
  func.func @transform_5(%arg0: i32) -> (i32, i32) {
    %c0_i32 = arith.constant 0 : i32
    %c0_i32_0 = arith.constant 0 : i32
    %c0_i32_1 = arith.constant 0 : i32
    return %c0_i32, %c0_i32_0 : i32, i32
  }
  func.func @transform_6(%arg0: i32) -> (i32, i32) {
    %c0_i32 = arith.constant 0 : i32
    %c0_i32_0 = arith.constant 0 : i32
    %c0_i32_1 = arith.constant 0 : i32
    return %c0_i32, %c0_i32_0 : i32, i32
  }
  func.func @transform_7(%arg0: i32) -> (i32, i32) {
    %c0_i32 = arith.constant 0 : i32
    %c0_i32_0 = arith.constant 0 : i32
    return %arg0, %c0_i32 : i32, i32
  }
}

</mosaic_0001>

<bundles_post_ra>
// kernel: tpu_custom_call.1
= control target key start
LH: loop header
LB: loop body
LE: loop exit
PB: predicated region body
PF: predicated region fallthrough
CT: control target
= control target key end

     0   :  { %12 = vsyncpa [#allocation3], 0  ;;  %s2397_s0 = inlined_call_operand.hbm [shape: bf16[2,1024], index: 0, kind: input, shape index: {}]   ;;  %s2398_s1 = inlined_call_operand.hbm [shape: bf16[1024,256], index: 1, kind: input, shape index: {}]   ;;  %s2399_s2 = inlined_call_operand.hbm [shape: f32[1,256], index: 2, kind: input, shape index: {}]   ;;  %s2400_s3 = inlined_call_operand.hbm [shape: bf16[256,128], index: 3, kind: input, shape index: {}]   ;;  %s2401_s4 = inlined_call_operand.vmem [shape: f32[1,128], index: 4, kind: input, shape index: {}]   ;;  %s2402_s5 = inlined_call_operand.hbm [shape: bf16[128,128], index: 5, kind: input, shape index: {}]   ;;  %s2403_s6 = inlined_call_operand.vmem [shape: f32[1,128], index: 6, kind: input, shape index: {}]   ;;  %s2404_s7 = inlined_call_operand.hbm [shape: f32[2,128], index: 7, kind: output, shape index: {}]  }
   0x1   :  { %13 = vsyncpa [#allocation6], 0 }
   0x2   :  { %14 = vsyncpa [#allocation9], 0  ;;  %s31_s26 = sshll.u32 %s2398_s1, 4  ;;  %s32_s26 = int_to_ptr.hbm [resolvable:$true] %s31_s26 }
   0x3   :  { %15 = vsyncpa [#allocation4], 0  ;;  %s2291_s27 = smov [#allocation5]   ;;  %s55_s8 = sshll.u32 %s2400_s3, 4  ;;  %s56_s8 = int_to_ptr.hbm [resolvable:$true] %s55_s8 }
   0x4   :  { %s33_s28 = sshll.u32 %s2291_s27, 4  ;;  %s2292_s9 = smov 128   ;;  %s34_s28 = int_to_ptr.vmem [resolvable:$true] %s33_s28 }
   0x5   :  { %s2293_s10 = smov 8   ;;  %s2294_s11 = smov [#allocation8]  }
   0x6   :  { %39 = dma.hbm_to_vmem [thread:$0]  %s32_s26, 16384, %s34_s28, [#allocation6], %s2292_s9, %s2292_s9, %s2293_s10  }
   0x7   :  { %s57_s12 = sshll.u32 %s2294_s11, 4  ;;  %s2295_s13 = smov 64   ;;  %s58_s12 = int_to_ptr.vmem [resolvable:$true] %s57_s12 }
   0x8   :  { %s2296_s14 = smov 4   ;;  %s21_s16 = sshll.u32 %s2397_s0, 4  ;;  %s22_s16 = int_to_ptr.hbm [resolvable:$true] %s21_s16 }
   0x9   :  { %63 = dma.hbm_to_vmem [thread:$0]  %s56_s8, 2048, %s58_s12, [#allocation9], %s2295_s13, %s2295_s13, %s2296_s14  }
   0xa   :  { %s2297_s17 = smov [#allocation2]   ;;  %s45_s20 = sshll.u32 %s2399_s2, 4  ;;  %s46_s20 = int_to_ptr.hbm [resolvable:$true] %s45_s20 }
   0xb   :  { %s23_s18 = sshll.u32 %s2297_s17, 4  ;;  %s2298_s21 = smov [#allocation7]   ;;  %s24_s18 = int_to_ptr.vmem [resolvable:$true] %s23_s18 }
   0xc   :  { %26 = dma.hbm_to_vmem [thread:$0]  %s22_s16, 128, %s24_s18, [#allocation3]  }
   0xd   :  { %s47_s22 = sshll.u32 %s2298_s21, 4  ;;  %s70_s25 = sshll.u32 %s2402_s5, 4  ;;  %s48_s22 = int_to_ptr.vmem [resolvable:$true] %s47_s22  ;;  %s71_s25 = int_to_ptr.hbm [resolvable:$true] %s70_s25 }
   0xe   :  { %50 = dma.hbm_to_vmem [thread:$0]  %s46_s20, 32, %s48_s22, [#allocation6]  }
   0xf   :  { %s2299_s0 = smov [#allocation10]  }
  0x10   :  { %s72_s26 = sshll.u32 %s2299_s0, 4  ;;  %s73_s26 = int_to_ptr.vmem [resolvable:$true] %s72_s26 }
  0x11   :  { %78 = dma.hbm_to_vmem [thread:$0]  %s71_s25, 1024, %s73_s26, [#allocation9], %s2295_s13, %s2295_s13, %s2296_s14  }
  0x12   :  { %2283 = dma.done.wait [#allocation3], 128  }
  0x13   :  { %2284 = vsyncadd [#allocation3], 4294967168 }
  0x14   :  { %2285 = dma.done.wait [#allocation6], 16416  }
  0x15   :  { %2286 = vsyncadd [#allocation6], 4294950880 }
  0x16   :  { %2287 = dma.done.wait [#allocation9], 3072  }
  0x17   :  { %2288 = vsyncadd [#allocation9], 4294964224  ;;  %v1425_v0 = vld [vmem:[#allocation5 + $0x70] sm:$0xf]  ;;  %v1990_v1 = vld [vmem:[#allocation5 + $0x74] sm:$0xf0] }
  0x18   :  { %v1489_v2 = vld [vmem:[#allocation5 + $0xf0] sm:$0xf]  ;;  %v1426_v3 = vor.u32 %v1990_v1, %v1425_v0  ;;  %v2006_v4 = vld [vmem:[#allocation5 + $0xf4] sm:$0xf0]  ;;  %v1417_v11 = vld [vmem:[#allocation5 + $0x60] sm:$0xf] }
  0x19   :  { %v1553_v5 = vld [vmem:[#allocation5 + $0x170] sm:$0xf]  ;;  %v2022_v6 = vld [vmem:[#allocation5 + $0x174] sm:$0xf0]  ;;  %v1490_v7 = vor.u32 %v2006_v4, %v1489_v2  ;;  %v1988_v13 = vld [vmem:[#allocation5 + $0x64] sm:$0xf0] }
  0x1a   :  { %v1554_v8 = vor.u32 %v2022_v6, %v1553_v5  ;;  %v1617_v9 = vld [vmem:[#allocation5 + $0x1f0] sm:$0xf]  ;;  %v2038_v10 = vld [vmem:[#allocation5 + $0x1f4] sm:$0xf0]  ;;  %894 = vmatpush.bf16.msra.mxu0 %v1426_v3  ;;  %v1481_v14 = vld [vmem:[#allocation5 + $0xe0] sm:$0xf]  ;;  %v1418_v16 = vor.u32 %v1988_v13, %v1417_v11 }
  0x1b   :  { %v1618_v12 = vor.u32 %v2038_v10, %v1617_v9  ;;  %v2004_v15 = vld [vmem:[#allocation5 + $0xe4] sm:$0xf0]  ;;  %907 = vmatpush.bf16.msra.mxu1 %v1490_v7  ;;  %v1545_v18 = vld [vmem:[#allocation5 + $0x160] sm:$0xf]  ;;  %v1409_v23 = vld [vmem:[#allocation5 + $0x50] sm:$0xf] }
  0x1c   :  { %920 = vmatpush.bf16.msra.mxu2 %v1554_v8  ;;  %v1482_v17 = vor.u32 %v2004_v15, %v1481_v14  ;;  %v2020_v19 = vld [vmem:[#allocation5 + $0x164] sm:$0xf0]  ;;  %v1609_v20 = vld [vmem:[#allocation5 + $0x1e0] sm:$0xf]  ;;  %v1986_v24 = vld [vmem:[#allocation5 + $0x54] sm:$0xf0] }
  0x1d   :  { %933 = vmatpush.bf16.msra.mxu3 %v1618_v12  ;;  %v1546_v21 = vor.u32 %v2020_v19, %v1545_v18  ;;  %v2036_v22 = vld [vmem:[#allocation5 + $0x1e4] sm:$0xf0]  ;;  %v1473_v26 = vld [vmem:[#allocation5 + $0xd0] sm:$0xf]  ;;  %v2002_v27 = vld [vmem:[#allocation5 + $0xd4] sm:$0xf0]  ;;  %v1410_v29 = vor.u32 %v1986_v24, %v1409_v23 }
  0x1e   :  { %v1610_v25 = vor.u32 %v2036_v22, %v1609_v20  ;;  %v1537_v28 = vld [vmem:[#allocation5 + $0x150] sm:$0xf]  ;;  %895 = vmatpush.bf16.msra.mxu0 %v1418_v16  ;;  %v2018_v30 = vld [vmem:[#allocation5 + $0x154] sm:$0xf0]  ;;  %v1474_v33 = vor.u32 %v2002_v27, %v1473_v26  ;;  %v1401_v35 = vld [vmem:[#allocation5 + $0x40] sm:$0xf] }
  0x1f   :  { %v1601_v31 = vld [vmem:[#allocation5 + $0x1d0] sm:$0xf]  ;;  %v2034_v32 = vld [vmem:[#allocation5 + $0x1d4] sm:$0xf0]  ;;  %908 = vmatpush.bf16.msra.mxu1 %v1482_v17  ;;  %v1538_v34 = vor.u32 %v2018_v30, %v1537_v28  ;;  %v1984_v36 = vld [vmem:[#allocation5 + $0x44] sm:$0xf0] }
  0x20   :  { %921 = vmatpush.bf16.msra.mxu2 %v1546_v21  ;;  %v1465_v37 = vld [vmem:[#allocation5 + $0xc0] sm:$0xf]  ;;  %v1602_v38 = vor.u32 %v2034_v32, %v1601_v31  ;;  %v2000_v39 = vld [vmem:[#allocation5 + $0xc4] sm:$0xf0]  ;;  %v1402_v44 = vor.u32 %v1984_v36, %v1401_v35  ;;  %v1393_v47 = vld [vmem:[#allocation5 + $0x30] sm:$0xf] }
  0x21   :  { %934 = vmatpush.bf16.msra.mxu3 %v1610_v25  ;;  %v1529_v40 = vld [vmem:[#allocation5 + $0x140] sm:$0xf]  ;;  %v2016_v41 = vld [vmem:[#allocation5 + $0x144] sm:$0xf0]  ;;  %v1466_v45 = vor.u32 %v2000_v39, %v1465_v37  ;;  %v1982_v48 = vld [vmem:[#allocation5 + $0x34] sm:$0xf0] }
  0x22   :  { %v1593_v42 = vld [vmem:[#allocation5 + $0x1c0] sm:$0xf]  ;;  %v2032_v43 = vld [vmem:[#allocation5 + $0x1c4] sm:$0xf0]  ;;  %896 = vmatpush.bf16.msra.mxu0 %v1410_v29  ;;  %v1530_v46 = vor.u32 %v2016_v41, %v1529_v40  ;;  %v1457_v49 = vld [vmem:[#allocation5 + $0xb0] sm:$0xf]  ;;  %v1394_v56 = vor.u32 %v1982_v48, %v1393_v47 }
  0x23   :  { %909 = vmatpush.bf16.msra.mxu1 %v1474_v33  ;;  %v1594_v50 = vor.u32 %v2032_v43, %v1593_v42  ;;  %v1998_v51 = vld [vmem:[#allocation5 + $0xb4] sm:$0xf0]  ;;  %v1521_v52 = vld [vmem:[#allocation5 + $0x130] sm:$0xf]  ;;  %v1385_v59 = vld [vmem:[#allocation5 + $0x20] sm:$0xf] }
  0x24   :  { %922 = vmatpush.bf16.msra.mxu2 %v1538_v34  ;;  %v2014_v53 = vld [vmem:[#allocation5 + $0x134] sm:$0xf0]  ;;  %v1585_v54 = vld [vmem:[#allocation5 + $0x1b0] sm:$0xf]  ;;  %v1458_v57 = vor.u32 %v1998_v51, %v1457_v49  ;;  %v1980_v60 = vld [vmem:[#allocation5 + $0x24] sm:$0xf0] }
  0x25   :  { %935 = vmatpush.bf16.msra.mxu3 %v1602_v38  ;;  %v2030_v55 = vld [vmem:[#allocation5 + $0x1b4] sm:$0xf0]  ;;  %v1522_v58 = vor.u32 %v2014_v53, %v1521_v52  ;;  %v1449_v61 = vld [vmem:[#allocation5 + $0xa0] sm:$0xf]  ;;  %v1996_v63 = vld [vmem:[#allocation5 + $0xa4] sm:$0xf0]  ;;  %v1386_v4 = vor.u32 %v1980_v60, %v1385_v59 }
  0x26   :  { %897 = vmatpush.bf16.msra.mxu0 %v1402_v44  ;;  %v1586_v62 = vor.u32 %v2030_v55, %v1585_v54  ;;  %v1513_v0 = vld [vmem:[#allocation5 + $0x120] sm:$0xf]  ;;  %v2012_v1 = vld [vmem:[#allocation5 + $0x124] sm:$0xf0]  ;;  %v1450_v5 = vor.u32 %v1996_v63, %v1449_v61  ;;  %v1377_v7 = vld [vmem:[#allocation5 + $0x10] sm:$0xf] }
  0x27   :  { %910 = vmatpush.bf16.msra.mxu1 %v1466_v45  ;;  %v1577_v2 = vld [vmem:[#allocation5 + $0x1a0] sm:$0xf]  ;;  %v2028_v3 = vld [vmem:[#allocation5 + $0x1a4] sm:$0xf0]  ;;  %v1514_v6 = vor.u32 %v2012_v1, %v1513_v0  ;;  %v1978_v8 = vld [vmem:[#allocation5 + $0x14] sm:$0xf0] }
  0x28   :  { %923 = vmatpush.bf16.msra.mxu2 %v1530_v46  ;;  %v1441_v9 = vld [vmem:[#allocation5 + $0x90] sm:$0xf]  ;;  %v1578_v10 = vor.u32 %v2028_v3, %v1577_v2  ;;  %v1994_v11 = vld [vmem:[#allocation5 + $0x94] sm:$0xf0]  ;;  %v1378_v16 = vor.u32 %v1978_v8, %v1377_v7  ;;  %v1369_v17 = vld [vmem:[#allocation5] sm:$0xf] }
  0x29   :  { %936 = vmatpush.bf16.msra.mxu3 %v1594_v50  ;;  %v1505_v12 = vld [vmem:[#allocation5 + $0x110] sm:$0xf]  ;;  %v2010_v13 = vld [vmem:[#allocation5 + $0x114] sm:$0xf0]  ;;  %v1976_v18 = vld [vmem:[#allocation5 + $0x4] sm:$0xf0]  ;;  %v1442_v19 = vor.u32 %v1994_v11, %v1441_v9 }
  0x2a   :  { %898 = vmatpush.bf16.msra.mxu0 %v1394_v56  ;;  %v1569_v14 = vld [vmem:[#allocation5 + $0x190] sm:$0xf]  ;;  %v2026_v15 = vld [vmem:[#allocation5 + $0x194] sm:$0xf0]  ;;  %v1506_v20 = vor.u32 %v2010_v13, %v1505_v12  ;;  %v1433_v21 = vld [vmem:[#allocation5 + $0x80] sm:$0xf]  ;;  %v1370_v31 = vor.u32 %v1976_v18, %v1369_v17 }
  0x2b   :  { %911 = vmatpush.bf16.msra.mxu1 %v1458_v57  ;;  %v1992_v22 = vld [vmem:[#allocation5 + $0x84] sm:$0xf0]  ;;  %v1497_v23 = vld [vmem:[#allocation5 + $0x100] sm:$0xf]  ;;  %v1570_v24 = vor.u32 %v2026_v15, %v1569_v14  ;;  %v1681_v28 = vld [vmem:[#allocation5 + $0x270] sm:$0xf] }
  0x2c   :  { %924 = vmatpush.bf16.msra.mxu2 %v1522_v58  ;;  %v2008_v25 = vld [vmem:[#allocation5 + $0x104] sm:$0xf0]  ;;  %v1561_v26 = vld [vmem:[#allocation5 + $0x180] sm:$0xf]  ;;  %v2054_v29 = vld [vmem:[#allocation5 + $0x274] sm:$0xf0]  ;;  %v1434_v35 = vor.u32 %v1992_v22, %v1433_v21 }
  0x2d   :  { %937 = vmatpush.bf16.msra.mxu3 %v1586_v62  ;;  %v2024_v27 = vld [vmem:[#allocation5 + $0x184] sm:$0xf0]  ;;  %v1745_v30 = vld [vmem:[#allocation5 + $0x2f0] sm:$0xf]  ;;  %v2070_v32 = vld [vmem:[#allocation5 + $0x2f4] sm:$0xf0]  ;;  %v1498_v36 = vor.u32 %v2008_v25, %v1497_v23  ;;  %v1682_v40 = vor.u32 %v2054_v29, %v1681_v28 }
  0x2e   :  { %899 = vmatpush.bf16.msra.mxu0 %v1386_v4  ;;  %v1809_v33 = vld [vmem:[#allocation5 + $0x370] sm:$0xf]  ;;  %v2086_v34 = vld [vmem:[#allocation5 + $0x374] sm:$0xf0]  ;;  %v1562_v39 = vor.u32 %v2024_v27, %v1561_v26  ;;  %v1746_v41 = vor.u32 %v2070_v32, %v1745_v30  ;;  %v1673_v43 = vld [vmem:[#allocation5 + $0x260] sm:$0xf] }
  0x2f   :  { %912 = vmatpush.bf16.msra.mxu1 %v1450_v5  ;;  %v1873_v37 = vld [vmem:[#allocation5 + $0x3f0] sm:$0xf]  ;;  %v2102_v38 = vld [vmem:[#allocation5 + $0x3f4] sm:$0xf0]  ;;  %v1810_v42 = vor.u32 %v2086_v34, %v1809_v33  ;;  %v2052_v44 = vld [vmem:[#allocation5 + $0x264] sm:$0xf0] }
  0x30   :  { %925 = vmatpush.bf16.msra.mxu2 %v1514_v6  ;;  %v1737_v45 = vld [vmem:[#allocation5 + $0x2e0] sm:$0xf]  ;;  %v1874_v46 = vor.u32 %v2102_v38, %v1873_v37  ;;  %v2068_v47 = vld [vmem:[#allocation5 + $0x2e4] sm:$0xf0]  ;;  %v101_v52 = vld [vmem:[#allocation2] sm:$0xff]  ;;  %v1674_v53 = vor.u32 %v2052_v44, %v1673_v43  ;;  %s2300_s29 = smov [#allocation11]  }
  0x31   :  { %938 = vmatpush.bf16.msra.mxu3 %v1578_v10  ;;  %v1801_v48 = vld [vmem:[#allocation5 + $0x360] sm:$0xf]  ;;  %v2084_v49 = vld [vmem:[#allocation5 + $0x364] sm:$0xf0]  ;;  %237 = vst [vmem:[#allocation1] ss:$9 sm:$0xff] %v101_v52  ;;  %v1738_v54 = vor.u32 %v2068_v47, %v1737_v45 }
  0x32   :  { %900 = vmatpush.bf16.msra.mxu0 %v1378_v16  ;;  %v1865_v50 = vld [vmem:[#allocation5 + $0x3e0] sm:$0xf]  ;;  %v2100_v51 = vld [vmem:[#allocation5 + $0x3e4] sm:$0xf0]  ;;  %v1802_v55 = vor.u32 %v2084_v49, %v1801_v48  ;;  %v1665_v56 = vld [vmem:[#allocation5 + $0x250] sm:$0xf] }
  0x33   :  { %913 = vmatpush.bf16.msra.mxu1 %v1442_v19  ;;  %v2050_v57 = vld [vmem:[#allocation5 + $0x254] sm:$0xf0]  ;;  %v1729_v58 = vld [vmem:[#allocation5 + $0x2d0] sm:$0xf]  ;;  %v1866_v59 = vor.u32 %v2100_v51, %v1865_v50  ;;  %v1657_v2 = vld [vmem:[#allocation5 + $0x240] sm:$0xf] }
  0x34   :  { %926 = vmatpush.bf16.msra.mxu2 %v1506_v20  ;;  %v2066_v60 = vld [vmem:[#allocation5 + $0x2d4] sm:$0xf0]  ;;  %v1793_v61 = vld [vmem:[#allocation5 + $0x350] sm:$0xf]  ;;  %v1666_v1 = vor.u32 %v2050_v57, %v1665_v56  ;;  %v2048_v5 = vld [vmem:[#allocation5 + $0x244] sm:$0xf0] }
  0x35   :  { %939 = vmatpush.bf16.msra.mxu3 %v1570_v24  ;;  %v2082_v62 = vld [vmem:[#allocation5 + $0x354] sm:$0xf0]  ;;  %v1857_v63 = vld [vmem:[#allocation5 + $0x3d0] sm:$0xf]  ;;  %v1730_v3 = vor.u32 %v2066_v60, %v1729_v58  ;;  %v1721_v6 = vld [vmem:[#allocation5 + $0x2c0] sm:$0xf]  ;;  %v1658_v15 = vor.u32 %v2048_v5, %v1657_v2 }
  0x36   :  { %901 = vmatpush.bf16.msra.mxu0 %v1370_v31  ;;  %v2098_v0 = vld [vmem:[#allocation5 + $0x3d4] sm:$0xf0]  ;;  %v1794_v4 = vor.u32 %v2082_v62, %v1793_v61  ;;  %v2064_v7 = vld [vmem:[#allocation5 + $0x2c4] sm:$0xf0]  ;;  %v1785_v9 = vld [vmem:[#allocation5 + $0x340] sm:$0xf] }
  0x37   :  { %914 = vmatpush.bf16.msra.mxu1 %v1434_v35  ;;  %v1858_v8 = vor.u32 %v2098_v0, %v1857_v63  ;;  %v2080_v10 = vld [vmem:[#allocation5 + $0x344] sm:$0xf0]  ;;  %v1849_v11 = vld [vmem:[#allocation5 + $0x3c0] sm:$0xf]  ;;  %v1722_v18 = vor.u32 %v2064_v7, %v1721_v6  ;;  %v1649_v20 = vld [vmem:[#allocation5 + $0x230] sm:$0xf] }
  0x38   :  { %927 = vmatpush.bf16.msra.mxu2 %v1498_v36  ;;  %v2096_v12 = vld [vmem:[#allocation5 + $0x3c4] sm:$0xf0]  ;;  %v2358_v14 = vld [vmem:[#allocation1] sm:$0xff]  ;;  %v2363_v17 = vld [vmem:[#allocation1 + $0x9] sm:$0xff]  ;;  %v1786_v19 = vor.u32 %v2080_v10, %v1785_v9  ;;  %s1353_s30 = sshll.u32 %s2300_s29, 4  ;;  %s1355_s10 = sshll.u32 %s2404_s7, 4  ;;  %s1354_s30 = int_to_ptr.vmem [resolvable:$true] %s1353_s30  ;;  %s1356_s10 = int_to_ptr.hbm [resolvable:$true] %s1355_s10 }
  0x39   :  { %940 = vmatpush.bf16.msra.mxu3 %v1562_v39  ;;  %v2356_v13 = vld [vmem:[#allocation1 + $0x12] sm:$0xff]  ;;  %v2361_v16 = vld [vmem:[#allocation1 + $0x1b] sm:$0xff]  ;;  %v2046_v21 = vld [vmem:[#allocation5 + $0x234] sm:$0xf0]  ;;  %v1850_v23 = vor.u32 %v2096_v12, %v1849_v11  ;;  %902 = vmatmul.bf16.vlgmr.msra.gmra.mxu0 %v2358_v14 }
  0x3a   :  { %946 = vmatpush.bf16.msrb.mxu0 %v1682_v40  ;;  %v1713_v22 = vld [vmem:[#allocation5 + $0x2b0] sm:$0xf]  ;;  %v2062_v24 = vld [vmem:[#allocation5 + $0x2b4] sm:$0xf0]  ;;  %915 = vmatmul.bf16.vlgmr.msra.gmra.mxu1 %v2363_v17  ;;  %v1650_v29 = vor.u32 %v2046_v21, %v1649_v20  ;;  %v1641_v32 = vld [vmem:[#allocation5 + $0x220] sm:$0xf] }
  0x3b   :  { %959 = vmatpush.bf16.msrb.mxu1 %v1746_v41  ;;  %928 = vmatmul.bf16.vlgmr.msra.gmra.mxu2 %v2356_v13  ;;  %v1777_v25 = vld [vmem:[#allocation5 + $0x330] sm:$0xf]  ;;  %v2078_v26 = vld [vmem:[#allocation5 + $0x334] sm:$0xf0]  ;;  %v1714_v30 = vor.u32 %v2062_v24, %v1713_v22  ;;  %v2044_v33 = vld [vmem:[#allocation5 + $0x224] sm:$0xf0] }
  0x3c   :  { %972 = vmatpush.bf16.msrb.mxu2 %v1810_v42  ;;  %v1841_v27 = vld [vmem:[#allocation5 + $0x3b0] sm:$0xf]  ;;  %v2094_v28 = vld [vmem:[#allocation5 + $0x3b4] sm:$0xf0]  ;;  %941 = vmatmul.bf16.vlgmr.msra.gmra.mxu3 %v2361_v16  ;;  %v1778_v31 = vor.u32 %v2078_v26, %v1777_v25  ;;  %v1705_v34 = vld [vmem:[#allocation5 + $0x2a0] sm:$0xf]  ;;  %v1642_v41 = vor.u32 %v2044_v33, %v1641_v32 }
  0x3d   :  { %985 = vmatpush.bf16.msrb.mxu3 %v1874_v46  ;;  %v1842_v35 = vor.u32 %v2094_v28, %v1841_v27  ;;  %v2060_v36 = vld [vmem:[#allocation5 + $0x2a4] sm:$0xf0]  ;;  %v1769_v37 = vld [vmem:[#allocation5 + $0x320] sm:$0xf]  ;;  %v1633_v44 = vld [vmem:[#allocation5 + $0x210] sm:$0xf] }
  0x3e   :  { %947 = vmatpush.bf16.msrb.mxu0 %v1674_v53  ;;  %v2076_v38 = vld [vmem:[#allocation5 + $0x324] sm:$0xf0]  ;;  %v1833_v39 = vld [vmem:[#allocation5 + $0x3a0] sm:$0xf]  ;;  %v1706_v42 = vor.u32 %v2060_v36, %v1705_v34  ;;  %v2042_v45 = vld [vmem:[#allocation5 + $0x214] sm:$0xf0] }
  0x3f   :  { %960 = vmatpush.bf16.msrb.mxu1 %v1738_v54  ;;  %v2092_v40 = vld [vmem:[#allocation5 + $0x3a4] sm:$0xf0]  ;;  %v1770_v43 = vor.u32 %v2076_v38, %v1769_v37  ;;  %v1697_v46 = vld [vmem:[#allocation5 + $0x290] sm:$0xf]  ;;  %v2058_v48 = vld [vmem:[#allocation5 + $0x294] sm:$0xf0]  ;;  %v1634_v53 = vor.u32 %v2042_v45, %v1633_v44 }
  0x40   :  { %973 = vmatpush.bf16.msrb.mxu2 %v1802_v55  ;;  %v1834_v47 = vor.u32 %v2092_v40, %v1833_v39  ;;  %v1761_v49 = vld [vmem:[#allocation5 + $0x310] sm:$0xf]  ;;  %v2074_v50 = vld [vmem:[#allocation5 + $0x314] sm:$0xf0]  ;;  %v1625_v54 = vld [vmem:[#allocation5 + $0x200] sm:$0xf]  ;;  %v1698_v56 = vor.u32 %v2058_v48, %v1697_v46 }
  0x41   :  { %986 = vmatpush.bf16.msrb.mxu3 %v1866_v59  ;;  %v1825_v51 = vld [vmem:[#allocation5 + $0x390] sm:$0xf]  ;;  %v2090_v52 = vld [vmem:[#allocation5 + $0x394] sm:$0xf0]  ;;  %v2040_v55 = vld [vmem:[#allocation5 + $0x204] sm:$0xf0]  ;;  %v1762_v57 = vor.u32 %v2074_v50, %v1761_v49 }
  0x42   :  { %948 = vmatpush.bf16.msrb.mxu0 %v1666_v1  ;;  %v1689_v58 = vld [vmem:[#allocation5 + $0x280] sm:$0xf]  ;;  %v2056_v59 = vld [vmem:[#allocation5 + $0x284] sm:$0xf0]  ;;  %v1826_v61 = vor.u32 %v2090_v52, %v1825_v51  ;;  %v1989_v1 = vld [vmem:[#allocation5 + $0x74] sm:$0xf] }
  0x43   :  { %961 = vmatpush.bf16.msrb.mxu1 %v1730_v3  ;;  %v1753_v60 = vld [vmem:[#allocation5 + $0x300] sm:$0xf]  ;;  %v2072_v62 = vld [vmem:[#allocation5 + $0x304] sm:$0xf0]  ;;  %v1427_v2 = vld [vmem:[#allocation5 + $0x78] sm:$0xf0] }
  0x44   :  { %974 = vmatpush.bf16.msrb.mxu2 %v1794_v4  ;;  %v1817_v63 = vld [vmem:[#allocation5 + $0x380] sm:$0xf]  ;;  %v2088_v0 = vld [vmem:[#allocation5 + $0x384] sm:$0xf0]  ;;  %v2005_v3 = vld [vmem:[#allocation5 + $0xf4] sm:$0xf]  ;;  %v1626_v4 = vor.u32 %v2040_v55, %v1625_v54  ;;  %v1754_v9 = vor.u32 %v2072_v62, %v1753_v60 }
  0x45   :  { %987 = vmatpush.bf16.msrb.mxu3 %v1858_v8  ;;  %v1491_v5 = vld [vmem:[#allocation5 + $0xf8] sm:$0xf0]  ;;  %v2021_v6 = vld [vmem:[#allocation5 + $0x174] sm:$0xf]  ;;  %v1690_v8 = vor.u32 %v2056_v59, %v1689_v58  ;;  %v1818_v12 = vor.u32 %v2088_v0, %v1817_v63  ;;  %v1987_v20 = vld [vmem:[#allocation5 + $0x64] sm:$0xf] }
  0x46   :  { %949 = vmatpush.bf16.msrb.mxu0 %v1658_v15  ;;  %v1555_v7 = vld [vmem:[#allocation5 + $0x178] sm:$0xf0]  ;;  %v2037_v10 = vld [vmem:[#allocation5 + $0x1f4] sm:$0xf]  ;;  %v1430_v15 = vor.u32 %v1989_v1, %v1427_v2  ;;  %v1419_v21 = vld [vmem:[#allocation5 + $0x68] sm:$0xf0] }
  0x47   :  { %962 = vmatpush.bf16.msrb.mxu1 %v1722_v18  ;;  %v1619_v11 = vld [vmem:[#allocation5 + $0x1f8] sm:$0xf0]  ;;  %v1494_v18 = vor.u32 %v2005_v3, %v1491_v5  ;;  %v2003_v22 = vld [vmem:[#allocation5 + $0xe4] sm:$0xf]  ;;  %v1483_v24 = vld [vmem:[#allocation5 + $0xe8] sm:$0xf0]  ;;  %v1422_v32 = vor.u32 %v1987_v20, %v1419_v21 }
  0x48   :  { %975 = vmatpush.bf16.msrb.mxu2 %v1786_v19  ;;  %v1558_v19 = vor.u32 %v2021_v6, %v1555_v7  ;;  %v2019_v25 = vld [vmem:[#allocation5 + $0x164] sm:$0xf]  ;;  %v1547_v26 = vld [vmem:[#allocation5 + $0x168] sm:$0xf0]  ;;  %v1486_v34 = vor.u32 %v2003_v22, %v1483_v24  ;;  %v1985_v36 = vld [vmem:[#allocation5 + $0x54] sm:$0xf] }
  0x49   :  { %988 = vmatpush.bf16.msrb.mxu3 %v1850_v23  ;;  %v1622_v23 = vor.u32 %v2037_v10, %v1619_v11  ;;  %v2368_v27 = vld [vmem:[#allocation1 + $0x36] sm:$0xff]  ;;  %v2374_v33 = vld [vmem:[#allocation1 + $0x2d] sm:$0xff]  ;;  %v2001_v38 = vld [vmem:[#allocation5 + $0xd4] sm:$0xf] }
  0x4a   :  { %950 = vmatpush.bf16.msrb.mxu0 %v1650_v29  ;;  %v2035_v28 = vld [vmem:[#allocation5 + $0x1e4] sm:$0xf]  ;;  %v1611_v29 = vld [vmem:[#allocation5 + $0x1e8] sm:$0xf0]  ;;  %v1411_v37 = vld [vmem:[#allocation5 + $0x58] sm:$0xf0] }
  0x4b   :  { %963 = vmatpush.bf16.msrb.mxu1 %v1714_v30  ;;  %v2370_v30 = vld [vmem:[#allocation1 + $0x24] sm:$0xff]  ;;  %v1614_v39 = vor.u32 %v2035_v28, %v1611_v29  ;;  %v1475_v40 = vld [vmem:[#allocation5 + $0xd8] sm:$0xf0]  ;;  %v1414_v45 = vor.u32 %v1985_v36, %v1411_v37  ;;  %v1983_v48 = vld [vmem:[#allocation5 + $0x44] sm:$0xf] }
  0x4c   :  { %976 = vmatpush.bf16.msrb.mxu2 %v1778_v31  ;;  %v2372_v31 = vld [vmem:[#allocation1 + $0x3f] sm:$0xff]  ;;  %v1603_v44 = vld [vmem:[#allocation5 + $0x1d8] sm:$0xf0]  ;;  %v1478_v46 = vor.u32 %v2001_v38, %v1475_v40  ;;  %v1999_v50 = vld [vmem:[#allocation5 + $0xc4] sm:$0xf] }
  0x4d   :  { %989 = vmatpush.bf16.msrb.mxu3 %v1842_v35  ;;  %v1550_v35 = vor.u32 %v2019_v25, %v1547_v26  ;;  %v1403_v49 = vld [vmem:[#allocation5 + $0x48] sm:$0xf0]  ;;  %v2031_v55 = vld [vmem:[#allocation5 + $0x1c4] sm:$0xf]  ;;  %v1981_v60 = vld [vmem:[#allocation5 + $0x34] sm:$0xf] }
  0x4e   :  { %951 = vmatpush.bf16.msrb.mxu0 %v1642_v41  ;;  %v2017_v41 = vld [vmem:[#allocation5 + $0x154] sm:$0xf]  ;;  %v1467_v52 = vld [vmem:[#allocation5 + $0xc8] sm:$0xf0]  ;;  %v1459_v0 = vld [vmem:[#allocation5 + $0xb8] sm:$0xf0] }
  0x4f   :  { %964 = vmatpush.bf16.msrb.mxu1 %v1706_v42  ;;  %v1539_v42 = vld [vmem:[#allocation5 + $0x158] sm:$0xf0]  ;;  %v1531_v54 = vld [vmem:[#allocation5 + $0x148] sm:$0xf0]  ;;  %v1470_v58 = vor.u32 %v1999_v50, %v1467_v52  ;;  %v1997_v62 = vld [vmem:[#allocation5 + $0xb4] sm:$0xf] }
  0x50   :  { %977 = vmatpush.bf16.msrb.mxu2 %v1770_v43  ;;  %v2033_v43 = vld [vmem:[#allocation5 + $0x1d4] sm:$0xf]  ;;  %v1523_v2 = vld [vmem:[#allocation5 + $0x138] sm:$0xf0]  ;;  %v1462_v6 = vor.u32 %v1997_v62, %v1459_v0  ;;  %v1995_v10 = vld [vmem:[#allocation5 + $0xa4] sm:$0xf] }
  0x51   :  { %990 = vmatpush.bf16.msrb.mxu3 %v1834_v47  ;;  %v1542_v47 = vor.u32 %v2017_v41, %v1539_v42  ;;  %v1606_v51 = vor.u32 %v2033_v43, %v1603_v44  ;;  %v2013_v1 = vld [vmem:[#allocation5 + $0x134] sm:$0xf]  ;;  %v1579_v20 = vld [vmem:[#allocation5 + $0x1a8] sm:$0xf0]  ;;  %v1379_v25 = vld [vmem:[#allocation5 + $0x18] sm:$0xf0] }
  0x52   :  { %952 = vmatpush.bf16.msrb.mxu0 %v1634_v53  ;;  %v2015_v53 = vld [vmem:[#allocation5 + $0x144] sm:$0xf]  ;;  %v2029_v3 = vld [vmem:[#allocation5 + $0x1b4] sm:$0xf]  ;;  %v1526_v7 = vor.u32 %v2013_v1, %v1523_v2  ;;  %v1443_v29 = vld [vmem:[#allocation5 + $0x98] sm:$0xf0] }
  0x53   :  { %965 = vmatpush.bf16.msrb.mxu1 %v1698_v56  ;;  %v1595_v56 = vld [vmem:[#allocation5 + $0x1c8] sm:$0xf0]  ;;  %v1534_v59 = vor.u32 %v2015_v53, %v1531_v54  ;;  %v1977_v24 = vld [vmem:[#allocation5 + $0x14] sm:$0xf]  ;;  %v1571_v36 = vld [vmem:[#allocation5 + $0x198] sm:$0xf0] }
  0x54   :  { %978 = vmatpush.bf16.msrb.mxu2 %v1762_v57  ;;  %v1406_v57 = vor.u32 %v1983_v48, %v1403_v49  ;;  %v1598_v63 = vor.u32 %v2031_v55, %v1595_v56  ;;  %v1993_v26 = vld [vmem:[#allocation5 + $0x94] sm:$0xf]  ;;  %v1975_v37 = vld [vmem:[#allocation5 + $0x4] sm:$0xf]  ;;  %v1382_v38 = vor.u32 %v1977_v24, %v1379_v25  ;;  %v1435_v41 = vld [vmem:[#allocation5 + $0x88] sm:$0xf0] }
  0x55   :  { %991 = vmatpush.bf16.msrb.mxu3 %v1826_v61  ;;  %v1395_v61 = vld [vmem:[#allocation5 + $0x38] sm:$0xf0]  ;;  %v1991_v40 = vld [vmem:[#allocation5 + $0x84] sm:$0xf]  ;;  %v1446_v42 = vor.u32 %v1993_v26, %v1443_v29  ;;  %v1563_v48 = vld [vmem:[#allocation5 + $0x188] sm:$0xf0] }
  0x56   :  { %953 = vmatpush.bf16.msrb.mxu0 %v1626_v4  ;;  %v1587_v4 = vld [vmem:[#allocation5 + $0x1b8] sm:$0xf0]  ;;  %v1398_v5 = vor.u32 %v1981_v60, %v1395_v61  ;;  %v2007_v44 = vld [vmem:[#allocation5 + $0x104] sm:$0xf]  ;;  %v2053_v49 = vld [vmem:[#allocation5 + $0x274] sm:$0xf]  ;;  %v1438_v56 = vor.u32 %v1991_v40, %v1435_v41 }
  0x57   :  { %966 = vmatpush.bf16.msrb.mxu1 %v1690_v8  ;;  %v1979_v8 = vld [vmem:[#allocation5 + $0x24] sm:$0xf]  ;;  %v1590_v11 = vor.u32 %v2029_v3, %v1587_v4  ;;  %v1683_v50 = vld [vmem:[#allocation5 + $0x278] sm:$0xf0]  ;;  %v2085_v54 = vld [vmem:[#allocation5 + $0x374] sm:$0xf] }
  0x58   :  { %979 = vmatpush.bf16.msrb.mxu2 %v1754_v9  ;;  %v1387_v9 = vld [vmem:[#allocation5 + $0x28] sm:$0xf0]  ;;  %v1747_v53 = vld [vmem:[#allocation5 + $0x2f8] sm:$0xf0]  ;;  %v1686_v61 = vor.u32 %v2053_v49, %v1683_v50  ;;  %v2051_v0 = vld [vmem:[#allocation5 + $0x264] sm:$0xf] }
  0x59   :  { %992 = vmatpush.bf16.msrb.mxu3 %v1818_v12  ;;  %954 = vmatmul.bf16.vlgmr.msrb.gmra.mxu0 %v2370_v30  ;;  %v1451_v12 = vld [vmem:[#allocation5 + $0xa8] sm:$0xf0]  ;;  %v1390_v21 = vor.u32 %v1979_v8, %v1387_v9  ;;  %v1811_v55 = vld [vmem:[#allocation5 + $0x378] sm:$0xf0]  ;;  %v2067_v2 = vld [vmem:[#allocation5 + $0x2e4] sm:$0xf] }
  0x5a   :  { %998 = vmatpush.bf16.msra.mxu0 %v1430_v15  ;;  %967 = vmatmul.bf16.vlgmr.msrb.gmra.mxu1 %v2374_v33  ;;  %v2011_v15 = vld [vmem:[#allocation5 + $0x124] sm:$0xf]  ;;  %v1454_v22 = vor.u32 %v1995_v10, %v1451_v12  ;;  %v1675_v1 = vld [vmem:[#allocation5 + $0x268] sm:$0xf0]  ;;  %v2049_v12 = vld [vmem:[#allocation5 + $0x254] sm:$0xf] }
  0x5b   :  { %1011 = vmatpush.bf16.msra.mxu1 %v1494_v18  ;;  %980 = vmatmul.bf16.vlgmr.msrb.gmra.mxu2 %v2368_v27  ;;  %v1515_v18 = vld [vmem:[#allocation5 + $0x128] sm:$0xf0]  ;;  %v1678_v9 = vor.u32 %v2051_v0, %v1675_v1  ;;  %v1859_v24 = vld [vmem:[#allocation5 + $0x3d8] sm:$0xf0]  ;;  %v2047_v29 = vld [vmem:[#allocation5 + $0x244] sm:$0xf] }
  0x5c   :  { %1024 = vmatpush.bf16.msra.mxu2 %v1558_v19  ;;  %993 = vmatmul.bf16.vlgmr.msrb.gmra.mxu3 %v2372_v31  ;;  %v2027_v19 = vld [vmem:[#allocation5 + $0x1a4] sm:$0xf]  ;;  %v1739_v4 = vld [vmem:[#allocation5 + $0x2e8] sm:$0xf0]  ;;  %v2045_v40 = vld [vmem:[#allocation5 + $0x234] sm:$0xf] }
  0x5d   :  { %1037 = vmatpush.bf16.msra.mxu3 %v1622_v23  ;;  %v1518_v23 = vor.u32 %v2011_v15, %v1515_v18  ;;  %v1582_v28 = vor.u32 %v2027_v19, %v1579_v20  ;;  %v1867_v8 = vld [vmem:[#allocation5 + $0x3e8] sm:$0xf0]  ;;  %v1742_v10 = vor.u32 %v2067_v2, %v1739_v4  ;;  %v1667_v15 = vld [vmem:[#allocation5 + $0x258] sm:$0xf0]  ;;  %v2065_v18 = vld [vmem:[#allocation5 + $0x2d4] sm:$0xf] }
  0x5e   :  { %999 = vmatpush.bf16.msra.mxu0 %v1422_v32  ;;  %v2009_v32 = vld [vmem:[#allocation5 + $0x114] sm:$0xf]  ;;  %v1731_v20 = vld [vmem:[#allocation5 + $0x2d8] sm:$0xf0]  ;;  %v1670_v25 = vor.u32 %v2049_v12, %v1667_v15  ;;  %v2039_v12 = vld [vmem:[#allocation5 + $0x204] sm:$0xf] }
  0x5f   :  { %1012 = vmatpush.bf16.msra.mxu1 %v1486_v34  ;;  %v1507_v34 = vld [vmem:[#allocation5 + $0x118] sm:$0xf0]  ;;  %v1734_v26 = vor.u32 %v2065_v18, %v1731_v20  ;;  %v2041_v0 = vld [vmem:[#allocation5 + $0x214] sm:$0xf]  ;;  %v1627_v15 = vld [vmem:[#allocation5 + $0x208] sm:$0xf0] }
  0x60   :  { %1025 = vmatpush.bf16.msra.mxu2 %v1550_v35  ;;  %v2025_v35 = vld [vmem:[#allocation5 + $0x194] sm:$0xf]  ;;  %v1510_v43 = vor.u32 %v2009_v32, %v1507_v34  ;;  %v1659_v32 = vld [vmem:[#allocation5 + $0x248] sm:$0xf0]  ;;  %v1651_v41 = vld [vmem:[#allocation5 + $0x238] sm:$0xf0] }
  0x61   :  { %1038 = vmatpush.bf16.msra.mxu3 %v1614_v39  ;;  %v1371_v39 = vld [vmem:[#allocation5 + $0x8] sm:$0xf0]  ;;  %v1654_v49 = vor.u32 %v2045_v40, %v1651_v41  ;;  %v1635_v1 = vld [vmem:[#allocation5 + $0x218] sm:$0xf0]  ;;  %v2057_v2 = vld [vmem:[#allocation5 + $0x294] sm:$0xf] }
  0x62   :  { %1000 = vmatpush.bf16.msra.mxu0 %v1414_v45  ;;  %v1499_v45 = vld [vmem:[#allocation5 + $0x108] sm:$0xf0]  ;;  %v1374_v52 = vor.u32 %v1975_v37, %v1371_v39  ;;  %v1699_v4 = vld [vmem:[#allocation5 + $0x298] sm:$0xf0]  ;;  %v2055_v18 = vld [vmem:[#allocation5 + $0x284] sm:$0xf] }
  0x63   :  { %1013 = vmatpush.bf16.msra.mxu1 %v1478_v46  ;;  %v2023_v46 = vld [vmem:[#allocation5 + $0x184] sm:$0xf]  ;;  %v1787_v37 = vld [vmem:[#allocation5 + $0x348] sm:$0xf0] }
  0x64   :  { %1026 = vmatpush.bf16.msra.mxu2 %v1542_v47  ;;  %v1574_v47 = vor.u32 %v2025_v35, %v1571_v36  ;;  %v1566_v60 = vor.u32 %v2023_v46, %v1563_v48  ;;  %v1723_v35 = vld [vmem:[#allocation5 + $0x2c8] sm:$0xf0]  ;;  %v2079_v36 = vld [vmem:[#allocation5 + $0x344] sm:$0xf]  ;;  %v1779_v46 = vld [vmem:[#allocation5 + $0x338] sm:$0xf0] }
  0x65   :  { %1039 = vmatpush.bf16.msra.mxu3 %v1606_v51  ;;  %v2069_v51 = vld [vmem:[#allocation5 + $0x2f4] sm:$0xf]  ;;  %v1843_v48 = vld [vmem:[#allocation5 + $0x3b8] sm:$0xf0]  ;;  %v1691_v20 = vld [vmem:[#allocation5 + $0x288] sm:$0xf0] }
  0x66   :  { %1001 = vmatpush.bf16.msra.mxu0 %v1406_v57  ;;  %v1502_v57 = vor.u32 %v2007_v44, %v1499_v45  ;;  %v1750_v62 = vor.u32 %v2069_v51, %v1747_v53  ;;  %v1715_v44 = vld [vmem:[#allocation5 + $0x2b8] sm:$0xf0]  ;;  %v2077_v45 = vld [vmem:[#allocation5 + $0x334] sm:$0xf]  ;;  %v1643_v53 = vld [vmem:[#allocation5 + $0x228] sm:$0xf0] }
  0x67   :  { %1014 = vmatpush.bf16.msra.mxu1 %v1470_v58  ;;  %v2101_v58 = vld [vmem:[#allocation5 + $0x3f4] sm:$0xf]  ;;  %v1782_v51 = vor.u32 %v2077_v45, %v1779_v46 }
  0x68   :  { %1027 = vmatpush.bf16.msra.mxu2 %v1534_v59  ;;  %v1875_v59 = vld [vmem:[#allocation5 + $0x3f8] sm:$0xf0] }
  0x69   :  { %1040 = vmatpush.bf16.msra.mxu3 %v1598_v63  ;;  %v1814_v63 = vor.u32 %v2085_v54, %v1811_v55  ;;  %v1878_v3 = vor.u32 %v2101_v58, %v1875_v59  ;;  %v2059_v54 = vld [vmem:[#allocation5 + $0x2a4] sm:$0xf]  ;;  %v1771_v58 = vld [vmem:[#allocation5 + $0x328] sm:$0xf0] }
  0x6a   :  { %1002 = vmatpush.bf16.msra.mxu0 %v1398_v5  ;;  %v2083_v5 = vld [vmem:[#allocation5 + $0x364] sm:$0xf] }
  0x6b   :  { %1015 = vmatpush.bf16.msra.mxu1 %v1462_v6  ;;  %v1803_v6 = vld [vmem:[#allocation5 + $0x368] sm:$0xf0]  ;;  %v2091_v59 = vld [vmem:[#allocation5 + $0x3a4] sm:$0xf] }
  0x6c   :  { %1028 = vmatpush.bf16.msra.mxu2 %v1526_v7  ;;  %v2099_v7 = vld [vmem:[#allocation5 + $0x3e4] sm:$0xf] }
  0x6d   :  { %1041 = vmatpush.bf16.msra.mxu3 %v1590_v11  ;;  %v1806_v11 = vor.u32 %v2083_v5, %v1803_v6  ;;  %v1870_v19 = vor.u32 %v2099_v7, %v1867_v8  ;;  %v2073_v5 = vld [vmem:[#allocation5 + $0x314] sm:$0xf]  ;;  %v1763_v6 = vld [vmem:[#allocation5 + $0x318] sm:$0xf0] }
  0x6e   :  { %1003 = vmatpush.bf16.msra.mxu0 %v1390_v21  ;;  %v2081_v21 = vld [vmem:[#allocation5 + $0x354] sm:$0xf]  ;;  %v1827_v8 = vld [vmem:[#allocation5 + $0x398] sm:$0xf0] }
  0x6f   :  { %1016 = vmatpush.bf16.msra.mxu1 %v1454_v22  ;;  %v1795_v22 = vld [vmem:[#allocation5 + $0x358] sm:$0xf0]  ;;  %v2089_v7 = vld [vmem:[#allocation5 + $0x394] sm:$0xf] }
  0x70   :  { %1029 = vmatpush.bf16.msra.mxu2 %v1518_v23  ;;  %v2097_v23 = vld [vmem:[#allocation5 + $0x3d4] sm:$0xf] }
  0x71   :  { %1042 = vmatpush.bf16.msra.mxu3 %v1582_v28  ;;  %v1798_v28 = vor.u32 %v2081_v21, %v1795_v22  ;;  %v1862_v34 = vor.u32 %v2097_v23, %v1859_v24  ;;  %v2071_v21 = vld [vmem:[#allocation5 + $0x304] sm:$0xf]  ;;  %v1755_v22 = vld [vmem:[#allocation5 + $0x308] sm:$0xf0] }
  0x72   :  { %1004 = vmatpush.bf16.msra.mxu0 %v1382_v38  ;;  %v2095_v38 = vld [vmem:[#allocation5 + $0x3c4] sm:$0xf]  ;;  %v1819_v24 = vld [vmem:[#allocation5 + $0x388] sm:$0xf0] }
  0x73   :  { %1017 = vmatpush.bf16.msra.mxu1 %v1446_v42  ;;  %v2061_v42 = vld [vmem:[#allocation5 + $0x2b4] sm:$0xf]  ;;  %v2087_v23 = vld [vmem:[#allocation5 + $0x384] sm:$0xf] }
  0x74   :  { %1030 = vmatpush.bf16.msra.mxu2 %v1510_v43  ;;  %v1718_v50 = vor.u32 %v2061_v42, %v1715_v44 }
  0x75   :  { %1043 = vmatpush.bf16.msra.mxu3 %v1574_v47  ;;  %v2093_v47 = vld [vmem:[#allocation5 + $0x3b4] sm:$0xf] }
  0x76   :  { %1005 = vmatpush.bf16.msra.mxu0 %v1374_v52  ;;  %v2043_v52 = vld [vmem:[#allocation5 + $0x224] sm:$0xf]  ;;  %v1846_v55 = vor.u32 %v2093_v47, %v1843_v48 }
  0x77   :  { %1018 = vmatpush.bf16.msra.mxu1 %v1438_v56  ;;  %v1707_v56 = vld [vmem:[#allocation5 + $0x2a8] sm:$0xf0] }
  0x78   :  { %1031 = vmatpush.bf16.msra.mxu2 %v1502_v57  ;;  %v2075_v57 = vld [vmem:[#allocation5 + $0x324] sm:$0xf] }
  0x79   :  { %1044 = vmatpush.bf16.msra.mxu3 %v1566_v60  ;;  %1006 = vmatmul.bf16.vlgmr.msra.gmra.mxu0 %v2358_v14  ;;  %v1851_v14 = vld [vmem:[#allocation5 + $0x3c8] sm:$0xf0] }
  0x7a   :  { %1050 = vmatpush.bf16.msrb.mxu0 %v1686_v61  ;;  %1019 = vmatmul.bf16.vlgmr.msra.gmra.mxu1 %v2363_v17  ;;  %v1790_v17 = vor.u32 %v2079_v36, %v1787_v37  ;;  %v1854_v43 = vor.u32 %v2095_v38, %v1851_v14  ;;  %v1835_v60 = vld [vmem:[#allocation5 + $0x3a8] sm:$0xf0]  ;;  %v1646_v61 = vor.u32 %v2043_v52, %v1643_v53  ;;  %v2106_v36 = vld [vmem:[#allocation8 + $0x18] sm:$0xff]  ;;  %v2105_v37 = vld [vmem:[#allocation8 + $0x10] sm:$0xff] }
  0x7b   :  { %1063 = vmatpush.bf16.msrb.mxu1 %v1750_v62  ;;  %1032 = vmatmul.bf16.vlgmr.msra.gmra.mxu2 %v2356_v13  ;;  %v2063_v13 = vld [vmem:[#allocation5 + $0x2c4] sm:$0xf]  ;;  %v1710_v62 = vor.u32 %v2059_v54, %v1707_v56  ;;  %v2104_v38 = vld [vmem:[#allocation8 + $0x8] sm:$0xff]  ;;  %v2118_v54 = vld [vmem:[#allocation8 + $0x78] sm:$0xff] }
  0x7c   :  { %1076 = vmatpush.bf16.msrb.mxu2 %v1814_v63  ;;  %1045 = vmatmul.bf16.vlgmr.msra.gmra.mxu3 %v2361_v16  ;;  %v1662_v16 = vor.u32 %v2047_v29, %v1659_v32  ;;  %v1726_v39 = vor.u32 %v2063_v13, %v1723_v35  ;;  %v1774_v63 = vor.u32 %v2075_v57, %v1771_v58  ;;  %v2110_v32 = vld [vmem:[#allocation8 + $0x38] sm:$0xff]  ;;  %v2109_v13 = vld [vmem:[#allocation8 + $0x30] sm:$0xff]  ;;  %v2107_v35 = vld [vmem:[#allocation8 + $0x20] sm:$0xff] }
  0x7d   :  { %1089 = vmatpush.bf16.msrb.mxu3 %v1878_v3  ;;  %v1838_v3 = vor.u32 %v2091_v59, %v1835_v60  ;;  %v1822_v29 = vor.u32 %v2087_v23, %v1819_v24  ;;  %v2117_v57 = vld [vmem:[#allocation8 + $0x70] sm:$0xff] }
  0x7e   :  { %1051 = vmatpush.bf16.msrb.mxu0 %v1678_v9  ;;  %v1638_v9 = vor.u32 %v2041_v0, %v1635_v1  ;;  %v2115_v0 = vld [vmem:[#allocation8 + $0x60] sm:$0xff]  ;;  %v2114_v1 = vld [vmem:[#allocation8 + $0x58] sm:$0xff] }
  0x7f   :  { %1064 = vmatpush.bf16.msrb.mxu1 %v1742_v10  ;;  %v1702_v10 = vor.u32 %v2057_v2, %v1699_v4  ;;  %v2113_v2 = vld [vmem:[#allocation8 + $0x50] sm:$0xff] }
  0x80   :  { %1077 = vmatpush.bf16.msrb.mxu2 %v1806_v11  ;;  %v1766_v11 = vor.u32 %v2073_v5, %v1763_v6  ;;  %v2112_v5 = vld [vmem:[#allocation8 + $0x48] sm:$0xff] }
  0x81   :  { %1090 = vmatpush.bf16.msrb.mxu3 %v1870_v19  ;;  %v1830_v19 = vor.u32 %v2089_v7, %v1827_v8 }
  0x82   :  { %1052 = vmatpush.bf16.msrb.mxu0 %v1670_v25  ;;  %v1630_v25 = vor.u32 %v2039_v12, %v1627_v15 }
  0x83   :  { %1065 = vmatpush.bf16.msrb.mxu1 %v1734_v26  ;;  %v1694_v26 = vor.u32 %v2055_v18, %v1691_v20 }
  0x84   :  { %1078 = vmatpush.bf16.msrb.mxu2 %v1798_v28  ;;  %v1758_v28 = vor.u32 %v2071_v21, %v1755_v22 }
  0x85   :  { %1091 = vmatpush.bf16.msrb.mxu3 %v1862_v34  ;;  %v2108_v34 = vld [vmem:[#allocation8 + $0x28] sm:$0xff] }
  0x86   :  { %1053 = vmatpush.bf16.msrb.mxu0 %v1662_v16  ;;  %v230_v16 = vld [vmem:[#allocation7] sm:$0x3] }
  0x87   :  { %1066 = vmatpush.bf16.msrb.mxu1 %v1726_v39  ;;  %v232_v39 = vperm.slane %v230_v16, 0 }
  0x88   :  { %1079 = vmatpush.bf16.msrb.mxu2 %v1790_v17 }
  0x89   :  { %1092 = vmatpush.bf16.msrb.mxu3 %v1854_v43 }
  0x8a   :  { %1054 = vmatpush.bf16.msrb.mxu0 %v1654_v49 }
  0x8b   :  { %1067 = vmatpush.bf16.msrb.mxu1 %v1718_v50 }
  0x8c   :  { %1080 = vmatpush.bf16.msrb.mxu2 %v1782_v51 }
  0x8d   :  { %1093 = vmatpush.bf16.msrb.mxu3 %v1846_v55 }
  0x8e   :  { %1055 = vmatpush.bf16.msrb.mxu0 %v1646_v61  ;;  %v2116_v61 = vld [vmem:[#allocation8 + $0x68] sm:$0xff] }
  0x8f   :  { %1068 = vmatpush.bf16.msrb.mxu1 %v1710_v62 }
  0x90   :  { %1081 = vmatpush.bf16.msrb.mxu2 %v1774_v63 }
  0x91   :  { %1094 = vmatpush.bf16.msrb.mxu3 %v1838_v3 }
  0x92   :  { %1056 = vmatpush.bf16.msrb.mxu0 %v1638_v9  ;;  %v2111_v9 = vld [vmem:[#allocation8 + $0x40] sm:$0xff] }
  0x93   :  { %1069 = vmatpush.bf16.msrb.mxu1 %v1702_v10 }
  0x94   :  { %1082 = vmatpush.bf16.msrb.mxu2 %v1766_v11  ;;  %v233_v11 = vperm.slane %v230_v16, 1  ;;  %v2125_v16 = vld [vmem:[#allocation10 + $0x30] sm:$0xff] }
  0x95   :  { %1095 = vmatpush.bf16.msrb.mxu3 %v1830_v19 }
  0x96   :  { %1057 = vmatpush.bf16.msrb.mxu0 %v1630_v25 }
  0x97   :  { %1070 = vmatpush.bf16.msrb.mxu1 %v1694_v26 }
  0x98   :  { %1083 = vmatpush.bf16.msrb.mxu2 %v1758_v28 }
  0x99   :  { %1096 = vmatpush.bf16.msrb.mxu3 %v1822_v29  ;;  %1058 = vmatmul.bf16.vlgmr.msrb.gmra.mxu0 %v2370_v30 }
  0x9a   :  { %1238 = vmatpush.bf16.msra.mxu0 %v2110_v32  ;;  %1071 = vmatmul.bf16.vlgmr.msrb.gmra.mxu1 %v2374_v33  ;;  %v2103_v33 = vld [vmem:[#allocation8] sm:$0xff] }
  0x9b   :  { %1084 = vmatmul.bf16.vlgmr.msrb.gmra.mxu2 %v2368_v27  ;;  %1251 = vmatpush.bf16.msra.mxu1 %v2118_v54 }
  0x9c   :  { %1097 = vmatmul.bf16.vlgmr.msrb.gmra.mxu3 %v2372_v31 }
  0x9e   :  { %1239 = vmatpush.bf16.msra.mxu0 %v2109_v13 }
  0x9f   :  { %1252 = vmatpush.bf16.msra.mxu1 %v2117_v57 }
  0xa2   :  { %1240 = vmatpush.bf16.msra.mxu0 %v2108_v34 }
  0xa3   :  { %1253 = vmatpush.bf16.msra.mxu1 %v2116_v61 }
  0xa6   :  { %1241 = vmatpush.bf16.msra.mxu0 %v2107_v35 }
  0xa7   :  { %1254 = vmatpush.bf16.msra.mxu1 %v2115_v0 }
  0xaa   :  { %1242 = vmatpush.bf16.msra.mxu0 %v2106_v36 }
  0xab   :  { %1255 = vmatpush.bf16.msra.mxu1 %v2114_v1 }
  0xae   :  { %1243 = vmatpush.bf16.msra.mxu0 %v2105_v37 }
  0xaf   :  { %1256 = vmatpush.bf16.msra.mxu1 %v2113_v2 }
  0xb2   :  { %1244 = vmatpush.bf16.msra.mxu0 %v2104_v38 }
  0xb3   :  { %1257 = vmatpush.bf16.msra.mxu1 %v2112_v5 }
  0xb6   :  { %v903_v14 = vpop.f32.mrf.mxu0  ;;  %1245 = vmatpush.bf16.msra.mxu0 %v2103_v33  ;;  %v2123_v33 = vld [vmem:[#allocation10 + $0x20] sm:$0xff] }
  0xb7   :  { %v916_v30 = vpop.f32.mrf.mxu1  ;;  %v904_v17 = vadd.f32 %v903_v14, %v232_v39  ;;  %1258 = vmatpush.bf16.msra.mxu1 %v2111_v9  ;;  %v2126_v14 = vld [vmem:[#allocation10 + $0x38] sm:$0xff] }
  0xb8   :  { %1334 = vmatpush.bf16.msra.mxu2 %v2126_v14  ;;  %v2122_v39 = vld [vmem:[#allocation10 + $0x18] sm:$0xff] }
  0xb9   :  { %v917_v42 = vadd.f32 %v916_v30, %v904_v17  ;;  %v2124_v30 = vld [vmem:[#allocation10 + $0x28] sm:$0xff] }
  0xbc   :  { %1335 = vmatpush.bf16.msra.mxu2 %v2125_v16 }
  0xbe   :  { %v929_v27 = vpop.f32.mrf.mxu2  ;;  %v905_v40 = vpop.f32.mrf.mxu0 }
  0xbf   :  { %v942_v31 = vpop.f32.mrf.mxu3  ;;  %v918_v41 = vpop.f32.mrf.mxu1  ;;  %v930_v45 = vadd.f32 %v929_v27, %v917_v42  ;;  %v2121_v27 = vld [vmem:[#allocation10 + $0x10] sm:$0xff]  ;;  %v2120_v40 = vld [vmem:[#allocation10 + $0x8] sm:$0xff] }
  0xc0   :  { %1336 = vmatpush.bf16.msra.mxu2 %v2124_v30  ;;  %v2119_v41 = vld [vmem:[#allocation10] sm:$0xff]  ;;  %v2137_v42 = vld [vmem:[%s2401_s4] ss:$0 sm:$0xff] }
  0xc1   :  { %v943_v46 = vadd.f32 %v942_v31, %v930_v45 }
  0xc4   :  { %1337 = vmatpush.bf16.msra.mxu2 %v2123_v33 }
  0xc6   :  { %v931_v43 = vpop.f32.mrf.mxu2 }
  0xc7   :  { %v944_v44 = vpop.f32.mrf.mxu3 }
  0xc8   :  { %1338 = vmatpush.bf16.msra.mxu2 %v2122_v39 }
  0xcc   :  { %1339 = vmatpush.bf16.msra.mxu2 %v2121_v27 }
  0xd0   :  { %1340 = vmatpush.bf16.msra.mxu2 %v2120_v40 }
  0xd4   :  { %1341 = vmatpush.bf16.msra.mxu2 %v2119_v41 }
  0xd6   :  { %v955_v47 = vpop.f32.mrf.mxu0 }
  0xd7   :  { %v956_v48 = vadd.f32 %v955_v47, %v943_v46  ;;  %v968_v49 = vpop.f32.mrf.mxu1 }
  0xd9   :  { %v969_v50 = vadd.f32 %v968_v49, %v956_v48  ;;  %v2138_v49 = vld [vmem:[%s2403_s6] ss:$0 sm:$0xff] }
  0xde   :  { %v981_v51 = vpop.f32.mrf.mxu2  ;;  %v957_v56 = vpop.f32.mrf.mxu0 }
  0xdf   :  { %v982_v52 = vadd.f32 %v981_v51, %v969_v50  ;;  %v994_v53 = vpop.f32.mrf.mxu3  ;;  %v970_v58 = vpop.f32.mrf.mxu1 }
  0xe1   :  { %v995_v55 = vadd.f32 %v994_v53, %v982_v52 }
  0xe3   :  { %v1102_v59 = vmax.f32 %v995_v55, 0.0 }
  0xe5   :  { %v1104_v60 = vpack.c.bf16 %v1102_v59, %v1102_v59 }
  0xe6   :  { %v983_v62 = vpop.f32.mrf.mxu2 }
  0xe7   :  { %1246 = vmatmul.bf16.vlgmr.msra.gmra.mxu0 %v1104_v60  ;;  %v996_v63 = vpop.f32.mrf.mxu3 }
  0xf6   :  { %v1007_v3 = vpop.f32.mrf.mxu0 }
  0xf7   :  { %v1020_v4 = vpop.f32.mrf.mxu1  ;;  %v1008_v18 = vadd.f32 %v1007_v3, %v233_v11 }
  0xf9   :  { %v1021_v19 = vadd.f32 %v1020_v4, %v1008_v18 }
  0xfe   :  { %v1033_v6 = vpop.f32.mrf.mxu2  ;;  %v1009_v8 = vpop.f32.mrf.mxu0 }
  0xff   :  { %v1046_v7 = vpop.f32.mrf.mxu3  ;;  %v1022_v10 = vpop.f32.mrf.mxu1  ;;  %v1034_v20 = vadd.f32 %v1033_v6, %v1021_v19 }
 0x101   :  { %v1047_v21 = vadd.f32 %v1046_v7, %v1034_v20 }
 0x106   :  { %v1035_v12 = vpop.f32.mrf.mxu2 }
 0x107   :  { %v1048_v15 = vpop.f32.mrf.mxu3 }
 0x116   :  { %v1059_v22 = vpop.f32.mrf.mxu0 }
 0x117   :  { %v1072_v23 = vpop.f32.mrf.mxu1  ;;  %v1060_v24 = vadd.f32 %v1059_v22, %v1047_v21 }
 0x119   :  { %v1073_v25 = vadd.f32 %v1072_v23, %v1060_v24 }
 0x11e   :  { %v1085_v26 = vpop.f32.mrf.mxu2  ;;  %v1061_v32 = vpop.f32.mrf.mxu0 }
 0x11f   :  { %v1086_v28 = vadd.f32 %v1085_v26, %v1073_v25  ;;  %v1098_v29 = vpop.f32.mrf.mxu3  ;;  %v1074_v13 = vpop.f32.mrf.mxu1 }
 0x121   :  { %v1099_v34 = vadd.f32 %v1098_v29, %v1086_v28 }
 0x123   :  { %v1103_v35 = vmax.f32 %v1099_v34, 0.0 }
 0x125   :  { %v1105_v36 = vpack.c.bf16 %v1103_v35, %v1103_v35 }
 0x126   :  { %v1087_v37 = vpop.f32.mrf.mxu2 }
 0x127   :  { %v1100_v38 = vpop.f32.mrf.mxu3  ;;  %1259 = vmatmul.bf16.vlgmr.msra.gmra.mxu1 %v1105_v36 }
 0x164   :  { %v1247_v31 = vpop.f32.mrf.mxu0 }
 0x165   :  { %v1248_v43 = vadd.f32 %v2137_v42, %v1247_v31 }
 0x16c   :  { %v1249_v17 = vpop.f32.mrf.mxu0 }
 0x1a4   :  { %v1260_v44 = vpop.f32.mrf.mxu1 }
 0x1a5   :  { %v1261_v45 = vadd.f32 %v1260_v44, %v1248_v43 }
 0x1a7   :  { %v1264_v46 = vmax.f32 %v1261_v45, 0.0 }
 0x1a9   :  { %v1265_v47 = vpack.c.bf16 %v1264_v46, %v1264_v46 }
 0x1ab   :  { %1342 = vmatmul.bf16.vlgmr.msra.gmra.mxu2 %v1265_v47 }
 0x1ac   :  { %v1262_v48 = vpop.f32.mrf.mxu1 }
 0x22e   :  { %v1343_v50 = vpop.f32.mrf.mxu2 }
 0x22f   :  { %v1344_v51 = vadd.f32 %v2138_v49, %v1343_v50 }
 0x231   :  { %1347 = vst [vmem:[#allocation11] sm:$0x3] %v1344_v51 }
 0x232   :  { %1358 = dma.vmem_to_hbm [thread:$0]  %s1354_s30, 32, %s1356_s10, [#allocation4]  }
 0x236   :  { %v1345_v52 = vpop.f32.mrf.mxu2 }
 0x237   :  { %2289 = dma.done.wait [#allocation4], 32  }
 0x238   :  { %2290 = vsyncadd [#allocation4], 4294967264 }
 0x239   :  { %1363 = vsyncpa [#allocation3], 1 }
 0x23a   :  { %1364 = vsyncpa [#allocation6], 1 }
 0x23b   :  { %1365 = vsyncpa [#allocation9], 1 }
 0x23c   :  { %1366 = vsyncpa [#allocation4], 1 }

</bundles_post_ra>
